<compile_context>
chip_gen: v5e
topology: v5e:2x2
jax: 0.10.0
libtpu: 0.0.40
codegen_flags: <defaults>
</compile_context>

<pallas_src>
import numpy as np
import jax
import jax.numpy as jnp
from jax.experimental import pallas as pl
from jax.experimental.pallas import tpu as pltpu


# ---------------------------------------------------------------------------
# Host-side: 1-D antialias bicubic resize matrix, matching PyTorch's
# _upsample_bicubic2d_aa / PIL (antialias=True, cubic a=-0.5, align_corners=False).
# ---------------------------------------------------------------------------
def _cubic_aa(x, a=-0.5):
    x = abs(x)
    if x < 1.0:
        return ((a + 2.0) * x - (a + 3.0)) * x * x + 1.0
    if x < 2.0:
        return (((x - 5.0) * x + 8.0) * x - 4.0) * a
    return 0.0


def resize_matrix_aa_bicubic(input_size, output_size):
    """Returns W of shape (output_size, input_size): out = W @ in along one dim."""
    scale = input_size / output_size
    interp_size = 4
    if scale >= 1.0:  # downsampling: widen filter support
        support = (interp_size / 2.0) * scale
        invscale = 1.0 / scale
    else:             # upsampling: standard cubic support
        support = interp_size / 2.0
        invscale = 1.0
    W = np.zeros((output_size, input_size), dtype=np.float64)
    for i in range(output_size):
        center = scale * (i + 0.5)
        xmin = max(int(center - support + 0.5), 0)  # int() truncates like C++ cast
        xsize = min(int(center + support + 0.5), input_size) - xmin
        ws = [_cubic_aa((j + xmin - center + 0.5) * invscale) for j in range(xsize)]
        total = sum(ws)
        for j in range(xsize):
            if total != 0.0:
                W[i, xmin + j] = ws[j] / total
    return W.astype(np.float32)


def _choose_images_per_step(nc, w, o):
    """Smallest divisor b of nc with lane-dense blocks (b*w, b*o multiples of 128).
    Falls back to the full batch (block == full array dim is exempt from the 128 rule)."""
    for b in range(1, nc + 1):
        if nc % b == 0 and (b * w) % 128 == 0 and (b * o) % 128 == 0:
            return b
    return nc


# ---------------------------------------------------------------------------
# Pallas kernel: fused (up-resize, LeakyReLU, resize) for a batch of B images
# stacked along the lane dimension. Four plain 2-D matmuls, no relayouts.
#   x_ref : (H,  B*W )   x[h, b*W + w]      = img_b[h, w]
#   a_ref : (2H, H)      height up-resize matrix
#   ka_ref: (B*W, B*2W)  kron(I_B, A^T)     width  up-resize (block-diagonal)
#   b_ref : (O,  2H)     height down-resize matrix
#   kb_ref: (B*2W, B*O)  kron(I_B, B2^T)    width  down-resize (block-diagonal)
#   o_ref : (O,  B*O)    out[o_h, b*O+o_w]  = result_b[o_h, o_w]   (lane-dense store)
# ---------------------------------------------------------------------------
def cno_lrelu_kernel(a_ref, ka_ref, b_ref, kb_ref, x_ref, o_ref):
    u = jnp.dot(a_ref[...], x_ref[...], preferred_element_type=jnp.float32)   # (2H, B*W)
    v = jnp.dot(u, ka_ref[...], preferred_element_type=jnp.float32)           # (2H, B*2W)
    v = jnp.where(v >= 0.0, v, 0.01 * v)                                       # LeakyReLU(0.01)
    p = jnp.dot(b_ref[...], v, preferred_element_type=jnp.float32)            # (O,  B*2W)
    z = jnp.dot(p, kb_ref[...], preferred_element_type=jnp.float32)           # (O,  B*O)
    o_ref[...] = z.astype(o_ref.dtype)


def cno_lrelu(x, in_size, out_size):
    """x: (N, C, in_size, in_size) float32 -> (N, C, out_size, out_size)."""
    N, C, H, W = x.shape
    assert H == in_size and W == in_size, "kernel assumes square in_size x in_size input"
    nc = N * C
    mid = 2 * in_size
    O = out_size

    Bimg = _choose_images_per_step(nc, W, O)
    grid_len = nc // Bimg
    bw, bmid, bo = Bimg * W, Bimg * mid, Bimg * O

    A_np = resize_matrix_aa_bicubic(in_size, mid)        # (mid, in)
    B_np = resize_matrix_aa_bicubic(mid, out_size)       # (out, mid)
    eye = np.eye(Bimg, dtype=np.float32)
    KA_np = np.kron(eye, A_np.T)                         # (B*in,  B*mid)
    KB_np = np.kron(eye, B_np.T)                         # (B*mid, B*out)

    A = jnp.asarray(A_np)
    Bm = jnp.asarray(B_np)
    KA = jnp.asarray(KA_np)
    KB = jnp.asarray(KB_np)

    # Lane-stacked input slab: xs[h, i*W + w] = x_flat[i, h, w]  (layout plumbing only).
    xs = jnp.transpose(x.reshape(nc, H, W), (1, 0, 2)).reshape(H, nc * W)

    # Advisory cost estimate (logical flops of the 4 separable-resize matmuls per image).
    flops = 2 * nc * (mid * H * W + mid * W * mid + O * mid * mid + O * mid * O)
    bytes_accessed = 4 * (nc * H * W + nc * O * O
                          + A.size + Bm.size + KA.size + KB.size)
    cost = pl.CostEstimate(flops=int(flops), transcendentals=0,
                           bytes_accessed=int(bytes_accessed))

    # Explicit VMEM budget: double-buffered operand blocks + headroom for intermediates,
    # capped at 32 MiB so the same setting is safe on v7x (64 MiB physical VMEM).
    operand_bytes = 4 * 2 * (mid * H + bw * bmid + O * mid + bmid * bo + H * bw + O * bo)
    vmem_limit = int(min(max(2 * operand_bytes + (8 << 20), 16 << 20), 32 << 20))

    out_flat = pl.pallas_call(
        cno_lrelu_kernel,
        out_shape=jax.ShapeDtypeStruct((O, nc * O), x.dtype),
        grid_spec=pltpu.PrefetchScalarGridSpec(
            num_scalar_prefetch=0,
            grid=(grid_len,),
            in_specs=[
                pl.BlockSpec((mid, in_size), lambda i: (0, 0)),   # A   (grid-invariant)
                pl.BlockSpec((bw, bmid), lambda i: (0, 0)),       # kron(I, A^T)
                pl.BlockSpec((O, mid), lambda i: (0, 0)),         # B2
                pl.BlockSpec((bmid, bo), lambda i: (0, 0)),       # kron(I, B2^T)
                pl.BlockSpec((H, bw), lambda i: (0, i)),          # lane-stacked images
            ],
            out_specs=pl.BlockSpec((O, bo), lambda i: (0, i)),    # lane-dense output slab
        ),
        compiler_params=pltpu.CompilerParams(
            dimension_semantics=("parallel",),
            vmem_limit_bytes=vmem_limit,
        ),
        cost_estimate=cost,
    )(A, KA, Bm, KB, xs)

    # (O, nc*O) -> (nc, O, O) -> (N, C, O, O)   (layout plumbing only)
    out = jnp.transpose(out_flat.reshape(O, nc, O), (1, 0, 2)).reshape(N, C, O, O)
    return out


if __name__ == "__main__":
    IN_SIZE = 16
    OUT_SIZE = 16
    N, C = 2, 4
    key = jax.random.PRNGKey(0)
    x = jax.random.normal(key, (N, C, IN_SIZE, IN_SIZE), dtype=jnp.float32)

    y = cno_lrelu(x, IN_SIZE, OUT_SIZE)
    jax.block_until_ready(y)
    assert y.shape == (N, C, OUT_SIZE, OUT_SIZE)
    assert y.dtype == jnp.float32

    # Pure-JAX reference (same separable antialias-bicubic matrices) to validate plumbing.
    A = jnp.asarray(resize_matrix_aa_bicubic(IN_SIZE, 2 * IN_SIZE))
    B = jnp.asarray(resize_matrix_aa_bicubic(2 * IN_SIZE, OUT_SIZE))
    up = jnp.einsum('gh,nchw,vw->ncgv', A, x, A)
    act = jnp.where(up >= 0.0, up, 0.01 * up)
    ref = jnp.einsum('og,ncgv,pv->ncop', B, act, B)
    np.testing.assert_allclose(np.asarray(y), np.asarray(ref), rtol=1e-4, atol=1e-4)

    print("KERNEL_OK")
</pallas_src>

<mosaic_0001>
module attributes {stable_mosaic.version = 11 : i64} {
  func.func @cno_lrelu_kernel(%arg0: i32, %arg1: memref<32x16xf32, #tpu.memory_space<vmem>>, %arg2: memref<128x256xf32, #tpu.memory_space<vmem>>, %arg3: memref<16x32xf32, #tpu.memory_space<vmem>>, %arg4: memref<256x128xf32, #tpu.memory_space<vmem>>, %arg5: memref<16x128xf32, #tpu.memory_space<vmem>>, %arg6: memref<16x128xf32, #tpu.memory_space<vmem>>) attributes {dimension_semantics = [#tpu.dimension_semantics<parallel>], iteration_bounds = array<i64: 1>, scalar_prefetch = 0 : i64, scratch_operands = 0 : i64, tpu.core_type = #tpu.core_type<tc>, window_params = [{pipeline_mode = #tpu.pipeline_mode<synchronous>, transform_indices = @transform_0, window_bounds = array<i64: 32, 16>}, {pipeline_mode = #tpu.pipeline_mode<synchronous>, transform_indices = @transform_1, window_bounds = array<i64: 128, 256>}, {pipeline_mode = #tpu.pipeline_mode<synchronous>, transform_indices = @transform_2, window_bounds = array<i64: 16, 32>}, {pipeline_mode = #tpu.pipeline_mode<synchronous>, transform_indices = @transform_3, window_bounds = array<i64: 256, 128>}, {transform_indices = @transform_4, window_bounds = array<i64: 16, 128>}, {transform_indices = @transform_5, window_bounds = array<i64: 16, 128>}]} {
    %c0 = arith.constant 0 : index
    %c0_0 = arith.constant 0 : index
    %0 = vector.load %arg1[%c0, %c0_0] : memref<32x16xf32, #tpu.memory_space<vmem>>, vector<32x16xf32>
    %c0_1 = arith.constant 0 : index
    %c0_2 = arith.constant 0 : index
    %1 = vector.load %arg5[%c0_1, %c0_2] : memref<16x128xf32, #tpu.memory_space<vmem>>, vector<16x128xf32>
    %cst = arith.constant dense<0.000000e+00> : vector<32x128xf32>
    %2 = tpu.matmul %0, %1, %cst {dimension_numbers = #tpu.dot_dimension_numbers<[1], [0], [0], [1], [0, 0, 1, 1], [], []>} : vector<32x16xf32>, vector<16x128xf32>, vector<32x128xf32> -> vector<32x128xf32>
    %c0_3 = arith.constant 0 : index
    %c0_4 = arith.constant 0 : index
    %3 = vector.load %arg2[%c0_3, %c0_4] : memref<128x256xf32, #tpu.memory_space<vmem>>, vector<128x256xf32>
    %cst_5 = arith.constant dense<0.000000e+00> : vector<32x256xf32>
    %4 = tpu.matmul %2, %3, %cst_5 {dimension_numbers = #tpu.dot_dimension_numbers<[1], [0], [0], [1], [0, 0, 1, 1], [], []>} : vector<32x128xf32>, vector<128x256xf32>, vector<32x256xf32> -> vector<32x256xf32>
    %cst_6 = arith.constant 0.000000e+00 : f32
    %5 = vector.broadcast %cst_6 : f32 to vector<32x256xf32>
    %6 = arith.cmpf oge, %4, %5 : vector<32x256xf32>
    %cst_7 = arith.constant 0.00999999977 : f32
    %7 = vector.broadcast %cst_7 : f32 to vector<32x256xf32>
    %8 = arith.mulf %7, %4 : vector<32x256xf32>
    %9 = arith.select %6, %4, %8 : vector<32x256xi1>, vector<32x256xf32>
    %c0_8 = arith.constant 0 : index
    %c0_9 = arith.constant 0 : index
    %10 = vector.load %arg3[%c0_8, %c0_9] : memref<16x32xf32, #tpu.memory_space<vmem>>, vector<16x32xf32>
    %cst_10 = arith.constant dense<0.000000e+00> : vector<16x256xf32>
    %11 = tpu.matmul %10, %9, %cst_10 {dimension_numbers = #tpu.dot_dimension_numbers<[1], [0], [0], [1], [0, 0, 1, 1], [], []>} : vector<16x32xf32>, vector<32x256xf32>, vector<16x256xf32> -> vector<16x256xf32>
    %c0_11 = arith.constant 0 : index
    %c0_12 = arith.constant 0 : index
    %12 = vector.load %arg4[%c0_11, %c0_12] : memref<256x128xf32, #tpu.memory_space<vmem>>, vector<256x128xf32>
    %cst_13 = arith.constant dense<0.000000e+00> : vector<16x128xf32>
    %13 = tpu.matmul %11, %12, %cst_13 {dimension_numbers = #tpu.dot_dimension_numbers<[1], [0], [0], [1], [0, 0, 1, 1], [], []>} : vector<16x256xf32>, vector<256x128xf32>, vector<16x128xf32> -> vector<16x128xf32>
    %c0_14 = arith.constant 0 : index
    %c0_15 = arith.constant 0 : index
    %14 = vector.load %arg6[%c0_14, %c0_15] : memref<16x128xf32, #tpu.memory_space<vmem>>, vector<16x128xf32>
    tpu.vector_store %arg6[%c0_14, %c0_15], %13 {strides = array<i32>} : memref<16x128xf32, #tpu.memory_space<vmem>>, vector<16x128xf32>,
    return
  }
  func.func @transform_0(%arg0: i32) -> (i32, i32) {
    %c0_i32 = arith.constant 0 : i32
    %c0_i32_0 = arith.constant 0 : i32
    %c0_i32_1 = arith.constant 0 : i32
    return %c0_i32, %c0_i32_0 : i32, i32
  }
  func.func @transform_1(%arg0: i32) -> (i32, i32) {
    %c0_i32 = arith.constant 0 : i32
    %c0_i32_0 = arith.constant 0 : i32
    %c0_i32_1 = arith.constant 0 : i32
    return %c0_i32, %c0_i32_0 : i32, i32
  }
  func.func @transform_2(%arg0: i32) -> (i32, i32) {
    %c0_i32 = arith.constant 0 : i32
    %c0_i32_0 = arith.constant 0 : i32
    %c0_i32_1 = arith.constant 0 : i32
    return %c0_i32, %c0_i32_0 : i32, i32
  }
  func.func @transform_3(%arg0: i32) -> (i32, i32) {
    %c0_i32 = arith.constant 0 : i32
    %c0_i32_0 = arith.constant 0 : i32
    %c0_i32_1 = arith.constant 0 : i32
    return %c0_i32, %c0_i32_0 : i32, i32
  }
  func.func @transform_4(%arg0: i32) -> (i32, i32) {
    %c0_i32 = arith.constant 0 : i32
    %c0_i32_0 = arith.constant 0 : i32
    return %c0_i32, %arg0 : i32, i32
  }
  func.func @transform_5(%arg0: i32) -> (i32, i32) {
    %c0_i32 = arith.constant 0 : i32
    %c0_i32_0 = arith.constant 0 : i32
    return %c0_i32, %arg0 : i32, i32
  }
}

</mosaic_0001>

<bundles_post_ra>
// kernel: tpu_custom_call.1
= control target key start
LH: loop header
LB: loop body
LE: loop exit
PB: predicated region body
PF: predicated region fallthrough
CT: control target
= control target key end

     0   :  { %10 = vsyncpa [#allocation3], 0  ;;  %s547_s0 = inlined_call_operand.vmem [shape: f32[32,16], index: 0, kind: input, shape index: {}]   ;;  %s548_s1 = inlined_call_operand.hbm [shape: f32[128,256], index: 1, kind: input, shape index: {}]   ;;  %s549_s2 = inlined_call_operand.vmem [shape: f32[16,32], index: 2, kind: input, shape index: {}]   ;;  %s550_s3 = inlined_call_operand.hbm [shape: f32[256,128], index: 3, kind: input, shape index: {}]   ;;  %s551_s4 = inlined_call_operand.vmem [shape: f32[16,128], index: 4, kind: input, shape index: {}]   ;;  %s552_s5 = inlined_call_operand.hbm [shape: f32[16,128], index: 5, kind: output, shape index: {}]  }
   0x1   :  { %11 = vsyncpa [#allocation6], 0 }
   0x2   :  { %12 = vsyncpa [#allocation4], 0  ;;  %s19_s20 = sshll.u32 %s548_s1, 4  ;;  %s463_s21 = smov [#allocation2]   ;;  %s20_s20 = int_to_ptr.hbm [resolvable:$true] %s19_s20 }
   0x3   :  { %s21_s22 = sshll.u32 %s463_s21, 4  ;;  %s34_s25 = sshll.u32 %s550_s3, 4  ;;  %s22_s22 = int_to_ptr.vmem [resolvable:$true] %s21_s22  ;;  %s35_s25 = int_to_ptr.hbm [resolvable:$true] %s34_s25 }
   0x4   :  { %s464_s26 = smov 256   ;;  %s465_s27 = smov 16  }
   0x5   :  { %27 = dma.hbm_to_vmem [thread:$0]  %s20_s20, 4096, %s22_s22, [#allocation3], %s464_s26, %s464_s26, %s465_s27  }
   0x6   :  { %s466_s28 = smov [#allocation5]   ;;  %s467_s30 = smov 128  }
   0x7   :  { %s36_s29 = sshll.u32 %s466_s28, 4  ;;  %s468_s6 = smov 8   ;;  %s37_s29 = int_to_ptr.vmem [resolvable:$true] %s36_s29 }
   0x8   :  { %42 = dma.hbm_to_vmem [thread:$0]  %s35_s25, 4096, %s37_s29, [#allocation6], %s467_s30, %s467_s30, %s468_s6  }
   0x9   :  { %457 = dma.done.wait [#allocation3], 4096  }
   0xa   :  { %458 = vsyncadd [#allocation3], 4294963200 }
   0xb   :  { %459 = dma.done.wait [#allocation6], 4096  }
   0xc   :  { %460 = vsyncadd [#allocation6], 4294963200  ;;  %v58_v0 = vld [vmem:[%s551_s4 + $0x8] sm:$0xff]  ;;  %v57_v1 = vld [vmem:[%s551_s4] sm:$0xff]  ;;  %vm59_vm0 = vcmask 130048   ;;  %vm217_vm6 = vcmask 261120  }
   0xd   :  { %86 = vmatpush.msra.mxu0 %v58_v0  ;;  %v53_v2 = vld [vmem:[%s547_s0] sm:$0xff]  ;;  %v131_v3 = vld [vmem:[#allocation2 + $0xf0] sm:$0xff]  ;;  %v132_v4 = vld [vmem:[#allocation2 + $0xf8] sm:$0xff]  ;;  %s356_s22 = sshll.u32 %s552_s5, 4  ;;  %s357_s22 = int_to_ptr.hbm [resolvable:$true] %s356_s22 }
   0xe   :  { %v129_v5 = vld [vmem:[#allocation2 + $0xe0] sm:$0xff]  ;;  %133 = vmatpush.msra.mxu1 %v131_v3  ;;  %v130_v6 = vld [vmem:[#allocation2 + $0xe8] sm:$0xff]  ;;  %162 = vmatpush.msra.mxu2 %v132_v4  ;;  %v127_v7 = vld [vmem:[#allocation2 + $0xd0] sm:$0xff] }
   0xf   :  { %87 = vmatpush.msra.mxu0 %v57_v1  ;;  %v128_v8 = vld [vmem:[#allocation2 + $0xd8] sm:$0xff]  ;;  %v125_v9 = vld [vmem:[#allocation2 + $0xc0] sm:$0xff]  ;;  %v126_v10 = vld [vmem:[#allocation2 + $0xc8] sm:$0xff] }
  0x10   :  { %370 = vmatmul.msk.f32.vlgmr.msra.gmra.mxu0 %vm59_vm0, %v53_v2  ;;  %134 = vmatpush.msra.mxu1 %v129_v5  ;;  %v123_v11 = vld [vmem:[#allocation2 + $0xb0] sm:$0xff]  ;;  %v54_v12 = vld [vmem:[%s547_s0 + $0x8] sm:$0xff]  ;;  %v124_v13 = vld [vmem:[#allocation2 + $0xb8] sm:$0xff] }
  0x11   :  { %163 = vmatpush.msra.mxu2 %v130_v6  ;;  %v121_v14 = vld [vmem:[#allocation2 + $0xa0] sm:$0xff]  ;;  %v122_v15 = vld [vmem:[#allocation2 + $0xa8] sm:$0xff]  ;;  %v119_v16 = vld [vmem:[#allocation2 + $0x90] sm:$0xff] }
  0x12   :  { %135 = vmatpush.msra.mxu1 %v127_v7  ;;  %v120_v17 = vld [vmem:[#allocation2 + $0x98] sm:$0xff]  ;;  %v117_v18 = vld [vmem:[#allocation2 + $0x80] sm:$0xff]  ;;  %v118_v19 = vld [vmem:[#allocation2 + $0x88] sm:$0xff] }
  0x13   :  { %164 = vmatpush.msra.mxu2 %v128_v8  ;;  %v115_v20 = vld [vmem:[#allocation2 + $0x70] sm:$0xff]  ;;  %v116_v22 = vld [vmem:[#allocation2 + $0x78] sm:$0xff]  ;;  %v113_v23 = vld [vmem:[#allocation2 + $0x60] sm:$0xff] }
  0x14   :  { %136 = vmatpush.msra.mxu1 %v125_v9  ;;  %v55_v21 = vld [vmem:[%s547_s0 + $0x10] sm:$0xff]  ;;  %v114_v24 = vld [vmem:[#allocation2 + $0x68] sm:$0xff]  ;;  %v112_v26 = vld [vmem:[#allocation2 + $0x58] sm:$0xff] }
  0x15   :  { %165 = vmatpush.msra.mxu2 %v126_v10  ;;  %v111_v25 = vld [vmem:[#allocation2 + $0x50] sm:$0xff]  ;;  %v109_v27 = vld [vmem:[#allocation2 + $0x40] sm:$0xff]  ;;  %v110_v28 = vld [vmem:[#allocation2 + $0x48] sm:$0xff] }
  0x16   :  { %137 = vmatpush.msra.mxu1 %v123_v11  ;;  %v107_v29 = vld [vmem:[#allocation2 + $0x30] sm:$0xff]  ;;  %v56_v30 = vld [vmem:[%s547_s0 + $0x18] sm:$0xff]  ;;  %v105_v32 = vld [vmem:[#allocation2 + $0x20] sm:$0xff] }
  0x17   :  { %166 = vmatpush.msra.mxu2 %v124_v13  ;;  %v108_v31 = vld [vmem:[#allocation2 + $0x38] sm:$0xff]  ;;  %v106_v33 = vld [vmem:[#allocation2 + $0x28] sm:$0xff]  ;;  %v103_v34 = vld [vmem:[#allocation2 + $0x10] sm:$0xff] }
  0x18   :  { %371 = vmatmul.msk.f32.gmra.mxu0 %vm59_vm0, %v54_v12  ;;  %138 = vmatpush.msra.mxu1 %v121_v14  ;;  %v104_v35 = vld [vmem:[#allocation2 + $0x18] sm:$0xff]  ;;  %v101_v36 = vld [vmem:[#allocation2] sm:$0xff]  ;;  %v102_v37 = vld [vmem:[#allocation2 + $0x8] sm:$0xff] }
  0x19   :  { %167 = vmatpush.msra.mxu2 %v122_v15  ;;  %v285_v53 = vld [vmem:[#allocation5 + $0x78] sm:$0xff]  ;;  %v284_v54 = vld [vmem:[#allocation5 + $0x70] sm:$0xff]  ;;  %v283_v57 = vld [vmem:[#allocation5 + $0x68] sm:$0xff] }
  0x1a   :  { %139 = vmatpush.msra.mxu1 %v119_v16  ;;  %302 = vmatpush.msrb.mxu0 %v285_v53  ;;  %v282_v61 = vld [vmem:[#allocation5 + $0x60] sm:$0xff]  ;;  %v281_v2 = vld [vmem:[#allocation5 + $0x58] sm:$0xff]  ;;  %v280_v4 = vld [vmem:[#allocation5 + $0x50] sm:$0xff] }
  0x1b   :  { %168 = vmatpush.msra.mxu2 %v120_v17  ;;  %v215_v62 = vld [vmem:[%s549_s2] sm:$0xff]  ;;  %v279_v7 = vld [vmem:[#allocation5 + $0x48] sm:$0xff]  ;;  %v277_v12 = vld [vmem:[#allocation5 + $0x38] sm:$0xff] }
  0x1c   :  { %140 = vmatpush.msra.mxu1 %v117_v18  ;;  %303 = vmatpush.msrb.mxu0 %v284_v54  ;;  %v278_v9 = vld [vmem:[#allocation5 + $0x40] sm:$0xff]  ;;  %v216_v10 = vld [vmem:[%s549_s2 + $0x8] sm:$0xff]  ;;  %v301_v13 = vld [vmem:[#allocation5 + $0xf8] sm:$0xff]  ;;  %s469_s2 = smov [#allocation7]  }
  0x1d   :  { %169 = vmatpush.msra.mxu2 %v118_v19  ;;  %v276_v14 = vld [vmem:[#allocation5 + $0x30] sm:$0xff]  ;;  %v275_v16 = vld [vmem:[#allocation5 + $0x28] sm:$0xff]  ;;  %v274_v18 = vld [vmem:[#allocation5 + $0x20] sm:$0xff]  ;;  %s354_s19 = sshll.u32 %s469_s2, 4  ;;  %s355_s19 = int_to_ptr.vmem [resolvable:$true] %s354_s19 }
  0x1e   :  { %141 = vmatpush.msra.mxu1 %v115_v20  ;;  %304 = vmatpush.msrb.mxu0 %v283_v57  ;;  %v300_v15 = vld [vmem:[#allocation5 + $0xf0] sm:$0xff]  ;;  %v299_v17 = vld [vmem:[#allocation5 + $0xe8] sm:$0xff]  ;;  %v298_v19 = vld [vmem:[#allocation5 + $0xe0] sm:$0xff] }
  0x1f   :  { %170 = vmatpush.msra.mxu2 %v116_v22  ;;  %v273_v20 = vld [vmem:[#allocation5 + $0x18] sm:$0xff]  ;;  %v272_v22 = vld [vmem:[#allocation5 + $0x10] sm:$0xff] }
  0x20   :  { %372 = vmatmul.msk.f32.gmra.mxu0 %vm59_vm0, %v55_v21  ;;  %142 = vmatpush.msra.mxu1 %v113_v23  ;;  %v297_v21 = vld [vmem:[#allocation5 + $0xd8] sm:$0xff]  ;;  %v296_v23 = vld [vmem:[#allocation5 + $0xd0] sm:$0xff] }
  0x21   :  { %171 = vmatpush.msra.mxu2 %v114_v24  ;;  %305 = vmatpush.msrb.mxu0 %v282_v61  ;;  %v271_v24 = vld [vmem:[#allocation5 + $0x8] sm:$0xff] }
  0x22   :  { %143 = vmatpush.msra.mxu1 %v111_v25  ;;  %v295_v25 = vld [vmem:[#allocation5 + $0xc8] sm:$0xff] }
  0x23   :  { %172 = vmatpush.msra.mxu2 %v112_v26  ;;  %306 = vmatpush.msrb.mxu0 %v281_v2  ;;  %v270_v26 = vld [vmem:[#allocation5] sm:$0xff] }
  0x24   :  { %144 = vmatpush.msra.mxu1 %v109_v27  ;;  %v294_v27 = vld [vmem:[#allocation5 + $0xc0] sm:$0xff] }
  0x25   :  { %173 = vmatpush.msra.mxu2 %v110_v28  ;;  %307 = vmatpush.msrb.mxu0 %v280_v4  ;;  %v293_v28 = vld [vmem:[#allocation5 + $0xb8] sm:$0xff] }
  0x26   :  { %145 = vmatpush.msra.mxu1 %v107_v29  ;;  %v292_v29 = vld [vmem:[#allocation5 + $0xb0] sm:$0xff] }
  0x27   :  { %174 = vmatpush.msra.mxu2 %v108_v31  ;;  %308 = vmatpush.msrb.mxu0 %v279_v7  ;;  %v290_v31 = vld [vmem:[#allocation5 + $0xa0] sm:$0xff] }
  0x28   :  { %373 = vmatmul.msk.f32.gmra.mxu0 %vm59_vm0, %v56_v30  ;;  %146 = vmatpush.msra.mxu1 %v105_v32  ;;  %v291_v30 = vld [vmem:[#allocation5 + $0xa8] sm:$0xff]  ;;  %v289_v32 = vld [vmem:[#allocation5 + $0x98] sm:$0xff] }
  0x29   :  { %175 = vmatpush.msra.mxu2 %v106_v33  ;;  %309 = vmatpush.msrb.mxu0 %v278_v9  ;;  %v288_v33 = vld [vmem:[#allocation5 + $0x90] sm:$0xff] }
  0x2a   :  { %147 = vmatpush.msra.mxu1 %v103_v34  ;;  %v287_v34 = vld [vmem:[#allocation5 + $0x88] sm:$0xff] }
  0x2b   :  { %176 = vmatpush.msra.mxu2 %v104_v35  ;;  %310 = vmatpush.msrb.mxu0 %v277_v12  ;;  %v286_v35 = vld [vmem:[#allocation5 + $0x80] sm:$0xff] }
  0x2c   :  { %148 = vmatpush.msra.mxu1 %v101_v36 }
  0x2d   :  { %177 = vmatpush.msra.mxu2 %v102_v37  ;;  %311 = vmatpush.msrb.mxu0 %v276_v14 }
  0x2f   :  { %312 = vmatpush.msrb.mxu0 %v275_v16 }
  0x31   :  { %313 = vmatpush.msrb.mxu0 %v274_v18 }
  0x33   :  { %314 = vmatpush.msrb.mxu0 %v273_v20 }
  0x35   :  { %315 = vmatpush.msrb.mxu0 %v272_v22 }
  0x37   :  { %316 = vmatpush.msrb.mxu0 %v271_v24 }
  0x39   :  { %317 = vmatpush.msrb.mxu0 %v270_v26 }
  0x8d   :  { %v89_v38 = vpop.f32.mrf.mxu0 }
  0x8e   :  { %149 = vmatmul.f32.vlgmr.msra.gmra.mxu1 %v89_v38  ;;  %178 = vmatmul.f32.vlgmr.msra.gmra.mxu2 %v89_v38 }
  0x95   :  { %v92_v39 = vpop.f32.mrf.mxu0 }
  0x96   :  { %152 = vmatmul.f32.gmra.mxu1 %v92_v39  ;;  %181 = vmatmul.f32.gmra.mxu2 %v92_v39 }
  0x9d   :  { %v95_v40 = vpop.f32.mrf.mxu0 }
  0x9e   :  { %155 = vmatmul.f32.gmra.mxu1 %v95_v40  ;;  %184 = vmatmul.f32.gmra.mxu2 %v95_v40 }
  0xa5   :  { %v98_v41 = vpop.f32.mrf.mxu0 }
  0xa6   :  { %158 = vmatmul.f32.gmra.mxu1 %v98_v41  ;;  %187 = vmatmul.f32.gmra.mxu2 %v98_v41 }
 0x10b   :  { %v150_v42 = vpop.f32.mrf.mxu1 }
 0x10c   :  { %v199_v55 = vmul.f32 0.01, %v150_v42  ;;  %vm191_vm4 = vcmp.ge.f32.partialorder %v150_v42, 0.0 }
 0x10e   :  { %v207_v0 = vsel %vm191_vm4, %v150_v42, %v199_v55 }
 0x111   :  { %v179_v43 = vpop.f32.mrf.mxu2 }
 0x112   :  { %v200_v5 = vmul.f32 0.01, %v179_v43  ;;  %vm192_vm9 = vcmp.ge.f32.partialorder %v179_v43, 0.0 }
 0x113   :  { %v153_v44 = vpop.f32.mrf.mxu1 }
 0x114   :  { %v201_v51 = vmul.f32 0.01, %v153_v44  ;;  %vm193_vm3 = vcmp.ge.f32.partialorder %v153_v44, 0.0  ;;  %v208_v11 = vsel %vm192_vm9, %v179_v43, %v200_v5 }
 0x116   :  { %v209_v60 = vsel %vm193_vm3, %v153_v44, %v201_v51 }
 0x119   :  { %v182_v45 = vpop.f32.mrf.mxu2 }
 0x11a   :  { %v202_v3 = vmul.f32 0.01, %v182_v45  ;;  %vm194_vm8 = vcmp.ge.f32.partialorder %v182_v45, 0.0 }
 0x11b   :  { %v156_v46 = vpop.f32.mrf.mxu1 }
 0x11c   :  { %v203_v49 = vmul.f32 0.01, %v156_v46  ;;  %vm195_vm2 = vcmp.ge.f32.partialorder %v156_v46, 0.0  ;;  %v210_v8 = vsel %vm194_vm8, %v182_v45, %v202_v3 }
 0x11e   :  { %v211_v56 = vsel %vm195_vm2, %v156_v46, %v203_v49 }
 0x121   :  { %v185_v47 = vpop.f32.mrf.mxu2 }
 0x122   :  { %v204_v63 = vmul.f32 0.01, %v185_v47  ;;  %vm196_vm7 = vcmp.ge.f32.partialorder %v185_v47, 0.0 }
 0x123   :  { %v159_v48 = vpop.f32.mrf.mxu1 }
 0x124   :  { %vm197_vm1 = vcmp.ge.f32.partialorder %v159_v48, 0.0  ;;  %v205_v50 = vmul.f32 0.01, %v159_v48  ;;  %v212_v6 = vsel %vm196_vm7, %v185_v47, %v204_v63 }
 0x126   :  { %v213_v52 = vsel %vm197_vm1, %v159_v48, %v205_v50 }
 0x127   :  { %236 = vmatpush.msra.mxu3 %v213_v52 }
 0x129   :  { %v188_v58 = vpop.f32.mrf.mxu2  ;;  %237 = vmatpush.msra.mxu3 %v211_v56 }
 0x12a   :  { %vm198_vm5 = vcmp.ge.f32.partialorder %v188_v58, 0.0  ;;  %v206_v59 = vmul.f32 0.01, %v188_v58 }
 0x12b   :  { %238 = vmatpush.msra.mxu3 %v209_v60 }
 0x12c   :  { %v214_v1 = vsel %vm198_vm5, %v188_v58, %v206_v59 }
 0x12d   :  { %239 = vmatpush.msra.mxu3 %v207_v0 }
 0x12e   :  { %374 = vmatmul.msk.f32.vlgmr.msra.gmra.mxu3 %vm217_vm6, %v215_v62 }
 0x12f   :  { %259 = vmatpush.msrb.mxu3 %v214_v1 }
 0x131   :  { %260 = vmatpush.msrb.mxu3 %v212_v6 }
 0x133   :  { %261 = vmatpush.msrb.mxu3 %v210_v8 }
 0x135   :  { %262 = vmatpush.msrb.mxu3 %v208_v11 }
 0x136   :  { %375 = vmatmul.msk.f32.gmra.mxu3 %vm217_vm6, %v216_v10 }
 0x137   :  { %325 = vmatpush.msra.mxu3 %v301_v13 }
 0x139   :  { %326 = vmatpush.msra.mxu3 %v300_v15 }
 0x13b   :  { %327 = vmatpush.msra.mxu3 %v299_v17 }
 0x13d   :  { %328 = vmatpush.msra.mxu3 %v298_v19 }
 0x13e   :  { %376 = vmatmul.msk.f32.vlgmr.msrb.gmra.mxu3 %vm217_vm6, %v215_v62 }
 0x13f   :  { %329 = vmatpush.msra.mxu3 %v297_v21 }
 0x141   :  { %330 = vmatpush.msra.mxu3 %v296_v23 }
 0x143   :  { %331 = vmatpush.msra.mxu3 %v295_v25 }
 0x145   :  { %332 = vmatpush.msra.mxu3 %v294_v27 }
 0x146   :  { %377 = vmatmul.msk.f32.gmra.mxu3 %vm217_vm6, %v216_v10 }
 0x147   :  { %333 = vmatpush.msra.mxu3 %v293_v28 }
 0x149   :  { %334 = vmatpush.msra.mxu3 %v292_v29 }
 0x14b   :  { %335 = vmatpush.msra.mxu3 %v291_v30 }
 0x14d   :  { %336 = vmatpush.msra.mxu3 %v290_v31 }
 0x14f   :  { %337 = vmatpush.msra.mxu3 %v289_v32 }
 0x151   :  { %338 = vmatpush.msra.mxu3 %v288_v33 }
 0x153   :  { %339 = vmatpush.msra.mxu3 %v287_v34 }
 0x155   :  { %340 = vmatpush.msra.mxu3 %v286_v35 }
 0x1b1   :  { %v241_v36 = vpop.f32.mrf.mxu3 }
 0x1b2   :  { %318 = vmatmul.f32.vlgmr.msrb.gmra.mxu0 %v241_v36 }
 0x1b9   :  { %v244_v37 = vpop.f32.mrf.mxu3 }
 0x1ba   :  { %321 = vmatmul.f32.gmra.mxu0 %v244_v37 }
 0x1c1   :  { %v264_v38 = vpop.f32.mrf.mxu3 }
 0x1c2   :  { %341 = vmatmul.f32.vlgmr.msra.gmra.mxu3 %v264_v38 }
 0x1c9   :  { %v267_v39 = vpop.f32.mrf.mxu3 }
 0x1ca   :  { %344 = vmatmul.f32.gmra.mxu3 %v267_v39 }
 0x22f   :  { %v319_v40 = vpop.f32.mrf.mxu0 }
 0x237   :  { %v322_v43 = vpop.f32.mrf.mxu0 }
 0x245   :  { %v342_v41 = vpop.f32.mrf.mxu3 }
 0x246   :  { %v343_v42 = vadd.f32 %v342_v41, %v319_v40 }
 0x248   :  { %348 = vst [vmem:[#allocation7] sm:$0xff] %v343_v42 }
 0x24d   :  { %v345_v44 = vpop.f32.mrf.mxu3 }
 0x24e   :  { %v346_v45 = vadd.f32 %v345_v44, %v322_v43 }
 0x250   :  { %349 = vst [vmem:[#allocation7 + $0x8] sm:$0xff] %v346_v45 }
 0x251   :  { %362 = dma.vmem_to_hbm [thread:$0]  %s355_s19, 256, %s357_s22, [#allocation4], %s467_s30, %s467_s30, %s468_s6  }
 0x252   :  { %461 = dma.done.wait [#allocation4], 256  }
 0x253   :  { %462 = vsyncadd [#allocation4], 4294967040 }
 0x254   :  { %367 = vsyncpa [#allocation3], 1 }
 0x255   :  { %368 = vsyncpa [#allocation6], 1 }
 0x256   :  { %369 = vsyncpa [#allocation4], 1 }

</bundles_post_ra>
